<compile_context>
chip_gen: v6e
topology: v6e:2x2x1
jax: 0.10.0
libtpu: 0.0.40
codegen_flags: <defaults>
</compile_context>

<pallas_src>
import functools
import math
import random

import jax
import jax.numpy as jnp
from jax.experimental import pallas as pl
from jax.experimental.pallas import tpu as pltpu


# ----------------------------------------------------------------------------
# Per-generation knobs (query the chip; fall back to the conservative v7x
# numbers if no TPU info is available, e.g. interpret mode).
# ----------------------------------------------------------------------------
def _vmem_capacity_bytes():
    try:
        return int(pltpu.get_tpu_info().vmem_capacity_bytes)
    except Exception:
        return 64 * 1024 * 1024  # conservative: v7x per-TensorCore VMEM


_VMEM_CAP = _vmem_capacity_bytes()
if _VMEM_CAP >= 96 * 1024 * 1024:        # v5e / v6e: 128 MiB physical VMEM
    _VMEM_LIMIT = 64 * 1024 * 1024
    _MAX_ROW_TILE = 1024                 # bigger tiles amortize per-step DMA
else:                                    # v7x: 64 MiB physical VMEM
    _VMEM_LIMIT = 32 * 1024 * 1024
    _MAX_ROW_TILE = 512


# ----------------------------------------------------------------------------
# Row-tiling helpers
# ----------------------------------------------------------------------------
def _round_up(x, m):
    return ((x + m - 1) // m) * m


def _cdiv(a, b):
    return -(-a // b)


def _choose_row_tile(n):
    """Row tile: full slab when small; otherwise >=2 balanced tiles.

    * >=2 grid steps so the "parallel" row axis can actually shard across
      v7x's 2 TensorCores.
    * Tiles are sized as cdiv(n, ntiles) so a row count just over a tile
      multiple does not pad nearly a full extra tile.
    """
    n8 = _round_up(max(n, 8), 8)
    if n8 <= 256:
        return n8
    ntiles = max(2, _cdiv(n8, _MAX_ROW_TILE))
    return _round_up(_cdiv(n8, ntiles), 8)


def _pad_rows(x, n_pad):
    pad = n_pad - x.shape[0]
    if pad:
        x = jnp.pad(x, ((0, pad), (0, 0)))
    return x


# ----------------------------------------------------------------------------
# Kernel 1: fused encoder MLP  y = relu(x @ W1 + b1) @ W2 + b2
#           (optional fused elementwise noise multiply on x)
# ----------------------------------------------------------------------------
def _encoder_mlp_kernel(x_ref, w1_ref, b1_ref, w2_ref, b2_ref, o_ref):
    # bf16 MXU inputs, f32 accumulate + f32 VPU epilogue (v5e-safe).
    x = x_ref[...]
    h1 = jnp.dot(x, w1_ref[...], preferred_element_type=jnp.float32)
    h1 = jnp.maximum(h1 + b1_ref[...], 0.0)
    h2 = jnp.dot(h1.astype(jnp.bfloat16), w2_ref[...],
                 preferred_element_type=jnp.float32)
    o_ref[...] = (h2 + b2_ref[...]).astype(o_ref.dtype)


def _encoder_mlp_noise_kernel(x_ref, n_ref, w1_ref, b1_ref, w2_ref, b2_ref,
                              o_ref):
    # Fused prologue: x * noise never hits HBM (saves ~3*B*S*H of traffic).
    x = x_ref[...] * n_ref[...]
    h1 = jnp.dot(x, w1_ref[...], preferred_element_type=jnp.float32)
    h1 = jnp.maximum(h1 + b1_ref[...], 0.0)
    h2 = jnp.dot(h1.astype(jnp.bfloat16), w2_ref[...],
                 preferred_element_type=jnp.float32)
    o_ref[...] = (h2 + b2_ref[...]).astype(o_ref.dtype)


def encoder_mlp(x, w1, b1, w2, b2, noise=None):
    """Fused 2-layer per-token MLP over a [N, H] slab (row-tiled Pallas).

    bf16 activation I/O (x in / y out), bf16 weights, f32 accumulate.
    """
    n, h = x.shape
    tm = _choose_row_tile(n)
    n_pad = _round_up(n, tm)
    grid = (n_pad // tm,)

    args = [_pad_rows(x.astype(jnp.bfloat16), n_pad)]
    in_specs = [pl.BlockSpec((tm, h), lambda i: (i, 0))]
    if noise is not None:
        args.append(_pad_rows(noise.astype(jnp.bfloat16), n_pad))
        in_specs.append(pl.BlockSpec((tm, h), lambda i: (i, 0)))
        kernel = _encoder_mlp_noise_kernel
    else:
        kernel = _encoder_mlp_kernel

    # Weights/biases: constant (0,0) index_maps -> VMEM-resident across the
    # grid.  (Could additionally be single-buffered via pipeline_mode on v7x.)
    args += [w1.astype(jnp.bfloat16), b1.reshape(1, h).astype(jnp.float32),
             w2.astype(jnp.bfloat16), b2.reshape(1, h).astype(jnp.float32)]
    in_specs += [
        pl.BlockSpec((h, h), lambda i: (0, 0)),
        pl.BlockSpec((1, h), lambda i: (0, 0)),
        pl.BlockSpec((h, h), lambda i: (0, 0)),
        pl.BlockSpec((1, h), lambda i: (0, 0)),
    ]

    n_act = 3 if noise is not None else 2
    flops = 2 * 2 * n_pad * h * h
    bytes_accessed = (n_act * n_pad * h * 2   # bf16 activations in/out
                      + 2 * h * h * 2         # two bf16 weight mats
                      + 2 * h * 4)            # f32 biases

    out = pl.pallas_call(
        kernel,
        out_shape=jax.ShapeDtypeStruct((n_pad, h), jnp.bfloat16),
        grid_spec=pl.GridSpec(
            grid=grid,
            in_specs=in_specs,
            out_specs=pl.BlockSpec((tm, h), lambda i: (i, 0)),
        ),
        compiler_params=pltpu.CompilerParams(
            dimension_semantics=("parallel",),
            vmem_limit_bytes=_VMEM_LIMIT),
        cost_estimate=pl.CostEstimate(
            flops=flops, transcendentals=0, bytes_accessed=bytes_accessed),
    )(*args)
    return out[:n]


# ----------------------------------------------------------------------------
# Kernel 2: fused noise_net + reparameterization + masked Gaussian KL
#   mu      = relu(h@W1+b1) @ W2_mu + b2_mu
#   log_var = relu(h@W1+b1) @ W2_lv + b2_lv
#   noise   = mu + eps * exp(0.5*log_var)         (eps passed in as bf16)
#   KL(N(mu, exp(logvar)) || N(1, prior_var))     per row, masked
# ----------------------------------------------------------------------------
def _noise_kl_kernel(h_ref, eps_ref, w1_ref, b1_ref, wmu_ref, bmu_ref,
                     wlv_ref, blv_ref, mask_ref,
                     noise_ref, klrow_ref, *, inv_prior_var, prior_logvar):
    h = h_ref[...]
    z1 = jnp.dot(h, w1_ref[...], preferred_element_type=jnp.float32)
    z1 = jnp.maximum(z1 + b1_ref[...], 0.0).astype(jnp.bfloat16)
    # Two [H,H] matmuls (instead of one [H,2H] + lane-dim slicing): mu and
    # log_var come out lane-dense with no relayout.
    mu = jnp.dot(z1, wmu_ref[...], preferred_element_type=jnp.float32) + bmu_ref[...]
    log_var = jnp.dot(z1, wlv_ref[...], preferred_element_type=jnp.float32) + blv_ref[...]

    # Single EUP exp per element: std = exp(0.5*logvar); var = std*std on VPU.
    std = jnp.exp(0.5 * log_var)
    eps = eps_ref[...].astype(jnp.float32)
    noise_ref[...] = (mu + eps * std).astype(noise_ref.dtype)

    # Gaussian KL vs prior N(mu=1, var=prior_var), prior_logvar=log(prior_var).
    var = std * std
    numerator = var + (mu - 1.0) ** 2
    per_row = 0.5 * jnp.sum(prior_logvar - log_var + numerator * inv_prior_var - 1.0,
                            axis=1, keepdims=True)
    klrow_ref[...] = per_row * mask_ref[...]      # padded / masked rows -> 0


def noise_and_kl(hiddens2d, w1, b1, wmu, bmu, wlv, blv, mask2d, eps2d,
                 dropout_prob):
    """Fused noise_net MLP + reparameterization + masked Gaussian KL."""
    n, hd = hiddens2d.shape
    tm = _choose_row_tile(n)
    n_pad = _round_up(n, tm)
    g = n_pad // tm

    hp = _pad_rows(hiddens2d.astype(jnp.bfloat16), n_pad)
    ep = _pad_rows(eps2d.astype(jnp.bfloat16), n_pad)
    mp = _pad_rows(mask2d.astype(jnp.float32), n_pad)

    prior_var = math.sqrt(dropout_prob / (1.0 - dropout_prob))
    prior_logvar = math.log(prior_var)

    kernel = functools.partial(_noise_kl_kernel,
                               inv_prior_var=1.0 / prior_var,
                               prior_logvar=prior_logvar)
    flops = 3 * 2 * n_pad * hd * hd
    bytes_accessed = (2 * n_pad * hd * 2      # h in, eps in (bf16)
                      + 3 * hd * hd * 2       # three bf16 weight mats
                      + 3 * hd * 4            # biases
                      + n_pad * 4             # mask + kl rows
                      + n_pad * hd * 2)       # noise out (bf16)

    noise, kl_rows = pl.pallas_call(
        kernel,
        out_shape=[jax.ShapeDtypeStruct((n_pad, hd), jnp.bfloat16),
                   jax.ShapeDtypeStruct((n_pad, 1), jnp.float32)],
        grid_spec=pl.GridSpec(
            grid=(g,),
            in_specs=[
                pl.BlockSpec((tm, hd), lambda i: (i, 0)),   # hiddens
                pl.BlockSpec((tm, hd), lambda i: (i, 0)),   # eps
                pl.BlockSpec((hd, hd), lambda i: (0, 0)),   # W1 (resident)
                pl.BlockSpec((1, hd), lambda i: (0, 0)),
                pl.BlockSpec((hd, hd), lambda i: (0, 0)),   # W2_mu (resident)
                pl.BlockSpec((1, hd), lambda i: (0, 0)),
                pl.BlockSpec((hd, hd), lambda i: (0, 0)),   # W2_lv (resident)
                pl.BlockSpec((1, hd), lambda i: (0, 0)),
                pl.BlockSpec((tm, 1), lambda i: (i, 0)),    # mask
            ],
            out_specs=[pl.BlockSpec((tm, hd), lambda i: (i, 0)),
                       pl.BlockSpec((tm, 1), lambda i: (i, 0))],
        ),
        compiler_params=pltpu.CompilerParams(
            dimension_semantics=("parallel",),
            vmem_limit_bytes=_VMEM_LIMIT),
        cost_estimate=pl.CostEstimate(
            flops=flops, transcendentals=n_pad * hd,
            bytes_accessed=bytes_accessed),
    )(hp, ep,
      w1.astype(jnp.bfloat16), b1.reshape(1, hd).astype(jnp.float32),
      wmu.astype(jnp.bfloat16), bmu.reshape(1, hd).astype(jnp.float32),
      wlv.astype(jnp.bfloat16), blv.reshape(1, hd).astype(jnp.float32), mp)

    denom = jnp.maximum(jnp.sum(mask2d), 1.0)   # count of valid rows (XLA)
    kl = jnp.sum(kl_rows[:n]) / denom
    return noise[:n], kl


# ----------------------------------------------------------------------------
# Deterministic parameter initialization (MXU weights stored bf16 once)
# ----------------------------------------------------------------------------
def init_params(key, vocab, hidden, n_class):
    def nrm(k, shape, dtype=jnp.float32):
        return (0.02 * jax.random.normal(k, shape)).astype(dtype)

    ks = jax.random.split(key, 10)
    H = hidden
    bf = jnp.bfloat16
    noise_w2 = nrm(ks[6], (H, 2 * H), bf)
    return {
        "embed": nrm(ks[0], (vocab, H), bf),
        # encoder stand-in (per-token MLP)
        "enc_w1": nrm(ks[1], (H, H), bf), "enc_b1": jnp.zeros((H,), jnp.float32),
        "enc_w2": nrm(ks[2], (H, H), bf), "enc_b2": jnp.zeros((H,), jnp.float32),
        # pooler + classifier head (tiny, stays f32 / XLA)
        "pool_w": nrm(ks[3], (H, H)), "pool_b": jnp.zeros((H,), jnp.float32),
        "cls_w": nrm(ks[4], (H, n_class)), "cls_b": jnp.zeros((n_class,), jnp.float32),
        # noise_net: Linear(H,H) -> ReLU -> Linear(H, 2H)  (pre-split mu / logvar)
        "noise_w1": nrm(ks[5], (H, H), bf), "noise_b1": jnp.zeros((H,), jnp.float32),
        "noise_w2_mu": noise_w2[:, :H], "noise_w2_lv": noise_w2[:, H:],
        "noise_b2_mu": jnp.zeros((H,), jnp.float32),
        "noise_b2_lv": jnp.zeros((H,), jnp.float32),
        # Gate: Linear(2H,H) -> ReLU -> Linear(H, 3)
        "gate_w1": nrm(ks[7], (2 * H, H)), "gate_b1": jnp.zeros((H,), jnp.float32),
        "gate_w2": nrm(ks[8], (H, 3)), "gate_b2": jnp.zeros((3,), jnp.float32),
    }


# ----------------------------------------------------------------------------
# BERT-lite encode + (XLA) classification head
# ----------------------------------------------------------------------------
def bert_encode_rows(params, x2d, noise=None):
    """Fused encoder MLP over a [rows, H] slab (optionally noised)."""
    return encoder_mlp(x2d, params["enc_w1"], params["enc_b1"],
                       params["enc_w2"], params["enc_b2"], noise=noise)


def classify_head(params, cls_tok, labels):
    """Pooler + classifier + per-example CE.  Tiny matmuls: plain XLA
    (a pallas_call here would be pure launch overhead + masked lane stores)."""
    cls_tok = cls_tok.astype(jnp.float32)
    pooled = jnp.tanh(cls_tok @ params["pool_w"] + params["pool_b"])
    logits = pooled @ params["cls_w"] + params["cls_b"]
    logp = jax.nn.log_softmax(logits, axis=-1)
    per_example = -logp[jnp.arange(labels.shape[0]), labels]
    return per_example, logits


# ----------------------------------------------------------------------------
# NewBert forward (aug=True, uniform=False, gate=True path)
# ----------------------------------------------------------------------------
def new_bert_forward(params, args, input_ids, attention_mask, token_type_ids,
                     input_chunk, labels, rng):
    del input_chunk, token_type_ids  # unused / not modeled by the stand-in
    input_ids = jnp.squeeze(input_ids)
    attention_mask = jnp.squeeze(attention_mask)
    B, S = input_ids.shape
    H = args["hidden_size"]

    # encoder(input_ids) -> hiddens (was under torch.no_grad(); same fwd value)
    token_embeds = params["embed"][input_ids]                    # [B, S, H] bf16
    embeds2d = token_embeds.reshape(B * S, H)
    hiddens2d = bert_encode_rows(params, embeds2d)               # [B*S, H] bf16
    inputs_embeds = token_embeds                                 # embeddings(input_ids)

    # TODO(synk): keyword_discriminator(hiddens, mask) output is never consumed — skipped.

    # Fused noise_net + reparameterization + masked Gaussian KL.
    # eps is drawn host-side with jax.random (bf16) and streamed into the
    # kernel: the in-kernel TPU PRNG has no interpret/CPU lowering.
    mask2d = attention_mask.reshape(B * S, 1).astype(jnp.float32)
    rng, k_eps = jax.random.split(rng)
    eps2d = jax.random.normal(k_eps, (B * S, H), dtype=jnp.float32)
    noise2d, kl = noise_and_kl(
        hiddens2d,
        params["noise_w1"], params["noise_b1"],
        params["noise_w2_mu"], params["noise_b2_mu"],
        params["noise_w2_lv"], params["noise_b2_lv"],
        mask2d, eps2d, args["hidden_dropout_prob"])               # noise2d bf16

    # zero_peturb: deterministic emulation of the python-random scribble,
    # collapsed into a single batched scatter (last write wins, like the loop).
    random.seed(0)
    rands = list(set(random.randint(1, B - 1) for _ in range(args["zero_peturb"])))
    pkey = jax.random.PRNGKey(1)
    updates = {}
    for index in rands:
        length = random.randint(1, 3)
        for _ in range(length):
            index_ = random.randint(1, S - 1)
            pkey, sub = jax.random.split(pkey)
            updates[(index, index_)] = jax.random.uniform(sub, (H,), dtype=jnp.float32)
    if updates:
        rows = jnp.array([k[0] for k in updates], jnp.int32)
        cols = jnp.array([k[1] for k in updates], jnp.int32)
        vecs = jnp.stack([updates[k] for k in updates]).astype(inputs_embeds.dtype)
        inputs_embeds = inputs_embeds.at[rows, cols].set(vecs)

    embeds2d_pert = inputs_embeds.reshape(B * S, H)

    # Noised + clean classification passes.  The `* noise` multiply is fused
    # into the encoder kernel prologue, so neither the noised-embedding slab
    # nor a [2B,S,H] concat is ever materialized in HBM.
    enc_noised = bert_encode_rows(params, embeds2d_pert, noise=noise2d)
    enc_clean = bert_encode_rows(params, embeds2d_pert)

    cls_noise = enc_noised.reshape(B, S, H)[:, 0, :].astype(jnp.float32)  # [B,H]
    cls = enc_clean.reshape(B, S, H)[:, 0, :].astype(jnp.float32)         # [B,H]

    noise_per, _ = classify_head(params, cls_noise, labels)
    nll_per, logits = classify_head(params, cls, labels)
    noise_loss = jnp.mean(noise_per)
    nll = jnp.mean(nll_per)

    if args["gate"]:
        cls_total = jnp.concatenate((cls_noise, cls), axis=1)    # [B, 2H]
        cls_total = jnp.mean(cls_total, axis=0)[None, :]         # [1, 2H]
        # Gate MLP: [1,2H]x[2H,H] + [1,H]x[H,3] — far too small for Pallas.
        g1 = jnp.maximum(cls_total @ params["gate_w1"] + params["gate_b1"], 0.0)
        res = g1 @ params["gate_w2"] + params["gate_b2"]         # [1, 3]
        gates = jax.nn.softmax(res, axis=-1)[0]                  # [3]
        loss = noise_loss * gates[0] + nll * gates[1]
    else:
        loss = nll + 0.001 * noise_loss

    return loss, kl, logits


# ----------------------------------------------------------------------------
if __name__ == "__main__":
    B, S, H, V, C = 2, 8, 32, 64, 3
    args = {
        "model": "bert-lite-standin", "n_class": C, "hidden_size": H,
        "gate": True, "aug": True, "uniform": False,
        "hidden_dropout_prob": 0.1, "zero_peturb": 1, "device": None,
    }

    key = jax.random.PRNGKey(0)
    k_param, k_ids, k_eps, k_chk = jax.random.split(key, 4)
    params = init_params(k_param, V, H, C)

    # Quick correctness smoke-check: fused encoder kernel vs pure-jnp reference
    # with identical bf16 casts.
    x_chk = jax.random.normal(k_chk, (B * S, H), dtype=jnp.float32)
    got = encoder_mlp(x_chk, params["enc_w1"], params["enc_b1"],
                      params["enc_w2"], params["enc_b2"]).astype(jnp.float32)
    xb = x_chk.astype(jnp.bfloat16)
    h1_ref = jnp.maximum(
        jnp.dot(xb, params["enc_w1"], preferred_element_type=jnp.float32)
        + params["enc_b1"], 0.0)
    ref = (jnp.dot(h1_ref.astype(jnp.bfloat16), params["enc_w2"],
                   preferred_element_type=jnp.float32)
           + params["enc_b2"]).astype(jnp.bfloat16).astype(jnp.float32)
    assert jnp.allclose(got, ref, rtol=1e-1, atol=1e-2), "encoder kernel mismatch"

    input_ids = jax.random.randint(k_ids, (B, 1, S), 0, V, dtype=jnp.int32)
    lengths = jnp.array([S, S - 2])
    attention_mask = (jnp.arange(S)[None, :] < lengths[:, None]).astype(jnp.int32)
    attention_mask = attention_mask[:, None, :]                  # [B, 1, S]
    token_type_ids = jnp.zeros((B, 1, S), jnp.int32)
    input_chunk = jnp.zeros((B, 1, S), jnp.int32)
    labels = jnp.array([0, 2], jnp.int32)

    loss, kl, logits = new_bert_forward(
        params, args, input_ids, attention_mask, token_type_ids,
        input_chunk, labels, k_eps)

    jax.block_until_ready((loss, kl, logits))
    assert logits.shape == (B, C)
    assert loss.shape == () and kl.shape == ()
    assert bool(jnp.isfinite(loss)) and bool(jnp.isfinite(kl))
    print("KERNEL_OK")
</pallas_src>

<mosaic_0001>
module attributes {stable_mosaic.version = 11 : i64} {
  func.func @_encoder_mlp_kernel(%arg0: i32, %arg1: memref<16x32xbf16, #tpu.memory_space<vmem>>, %arg2: memref<32x32xbf16, #tpu.memory_space<vmem>>, %arg3: memref<1x32xf32, #tpu.memory_space<vmem>>, %arg4: memref<32x32xbf16, #tpu.memory_space<vmem>>, %arg5: memref<1x32xf32, #tpu.memory_space<vmem>>, %arg6: memref<16x32xbf16, #tpu.memory_space<vmem>>) attributes {dimension_semantics = [#tpu.dimension_semantics<parallel>], iteration_bounds = array<i64: 1>, scalar_prefetch = 0 : i64, scratch_operands = 0 : i64, tpu.core_type = #tpu.core_type<tc>, window_params = [{transform_indices = @transform_0, window_bounds = array<i64: 16, 32>}, {pipeline_mode = #tpu.pipeline_mode<synchronous>, transform_indices = @transform_1, window_bounds = array<i64: 32, 32>}, {pipeline_mode = #tpu.pipeline_mode<synchronous>, transform_indices = @transform_2, window_bounds = array<i64: 1, 32>}, {pipeline_mode = #tpu.pipeline_mode<synchronous>, transform_indices = @transform_3, window_bounds = array<i64: 32, 32>}, {pipeline_mode = #tpu.pipeline_mode<synchronous>, transform_indices = @transform_4, window_bounds = array<i64: 1, 32>}, {transform_indices = @transform_5, window_bounds = array<i64: 16, 32>}]} {
    %c0 = arith.constant 0 : index
    %c0_0 = arith.constant 0 : index
    %0 = vector.load %arg1[%c0, %c0_0] : memref<16x32xbf16, #tpu.memory_space<vmem>>, vector<16x32xbf16>
    %c0_1 = arith.constant 0 : index
    %c0_2 = arith.constant 0 : index
    %1 = vector.load %arg2[%c0_1, %c0_2] : memref<32x32xbf16, #tpu.memory_space<vmem>>, vector<32x32xbf16>
    %cst = arith.constant dense<0.000000e+00> : vector<16x32xf32>
    %2 = tpu.matmul %0, %1, %cst {dimension_numbers = #tpu.dot_dimension_numbers<[1], [0], [0], [1], [0, 0, 1, 1], [], []>} : vector<16x32xbf16>, vector<32x32xbf16>, vector<16x32xf32> -> vector<16x32xf32>
    %c0_3 = arith.constant 0 : index
    %c0_4 = arith.constant 0 : index
    %3 = vector.load %arg3[%c0_3, %c0_4] : memref<1x32xf32, #tpu.memory_space<vmem>>, vector<1x32xf32>
    %4 = vector.broadcast %3 : vector<1x32xf32> to vector<16x32xf32>
    %5 = arith.addf %2, %4 : vector<16x32xf32>
    %cst_5 = arith.constant 0.000000e+00 : f32
    %6 = vector.broadcast %cst_5 : f32 to vector<16x32xf32>
    %7 = arith.maximumf %5, %6 : vector<16x32xf32>
    %8 = arith.truncf %7 : vector<16x32xf32> to vector<16x32xbf16>
    %c0_6 = arith.constant 0 : index
    %c0_7 = arith.constant 0 : index
    %9 = vector.load %arg4[%c0_6, %c0_7] : memref<32x32xbf16, #tpu.memory_space<vmem>>, vector<32x32xbf16>
    %cst_8 = arith.constant dense<0.000000e+00> : vector<16x32xf32>
    %10 = tpu.matmul %8, %9, %cst_8 {dimension_numbers = #tpu.dot_dimension_numbers<[1], [0], [0], [1], [0, 0, 1, 1], [], []>} : vector<16x32xbf16>, vector<32x32xbf16>, vector<16x32xf32> -> vector<16x32xf32>
    %c0_9 = arith.constant 0 : index
    %c0_10 = arith.constant 0 : index
    %11 = vector.load %arg5[%c0_9, %c0_10] : memref<1x32xf32, #tpu.memory_space<vmem>>, vector<1x32xf32>
    %12 = vector.broadcast %11 : vector<1x32xf32> to vector<16x32xf32>
    %13 = arith.addf %10, %12 : vector<16x32xf32>
    %14 = arith.truncf %13 : vector<16x32xf32> to vector<16x32xbf16>
    %c0_11 = arith.constant 0 : index
    %c0_12 = arith.constant 0 : index
    %15 = vector.load %arg6[%c0_11, %c0_12] : memref<16x32xbf16, #tpu.memory_space<vmem>>, vector<16x32xbf16>
    tpu.vector_store %arg6[%c0_11, %c0_12], %14 {strides = array<i32>} : memref<16x32xbf16, #tpu.memory_space<vmem>>, vector<16x32xbf16>,
    return
  }
  func.func @transform_0(%arg0: i32) -> (i32, i32) {
    %c0_i32 = arith.constant 0 : i32
    %c0_i32_0 = arith.constant 0 : i32
    return %arg0, %c0_i32 : i32, i32
  }
  func.func @transform_1(%arg0: i32) -> (i32, i32) {
    %c0_i32 = arith.constant 0 : i32
    %c0_i32_0 = arith.constant 0 : i32
    %c0_i32_1 = arith.constant 0 : i32
    return %c0_i32, %c0_i32_0 : i32, i32
  }
  func.func @transform_2(%arg0: i32) -> (i32, i32) {
    %c0_i32 = arith.constant 0 : i32
    %c0_i32_0 = arith.constant 0 : i32
    %c0_i32_1 = arith.constant 0 : i32
    return %c0_i32, %c0_i32_0 : i32, i32
  }
  func.func @transform_3(%arg0: i32) -> (i32, i32) {
    %c0_i32 = arith.constant 0 : i32
    %c0_i32_0 = arith.constant 0 : i32
    %c0_i32_1 = arith.constant 0 : i32
    return %c0_i32, %c0_i32_0 : i32, i32
  }
  func.func @transform_4(%arg0: i32) -> (i32, i32) {
    %c0_i32 = arith.constant 0 : i32
    %c0_i32_0 = arith.constant 0 : i32
    %c0_i32_1 = arith.constant 0 : i32
    return %c0_i32, %c0_i32_0 : i32, i32
  }
  func.func @transform_5(%arg0: i32) -> (i32, i32) {
    %c0_i32 = arith.constant 0 : i32
    %c0_i32_0 = arith.constant 0 : i32
    return %arg0, %c0_i32 : i32, i32
  }
}

</mosaic_0001>

<bundles_post_ra>
// kernel: tpu_custom_call.1
= control target key start
LH: loop header
LB: loop body
LE: loop exit
PB: predicated region body
PF: predicated region fallthrough
CT: control target
= control target key end

     0   :  { %10 = vsyncpa [#allocation3], 0  ;;  %s441_s0 = inlined_call_operand.hbm [shape: bf16[16,32], index: 0, kind: input, shape index: {}]   ;;  %s442_s1 = inlined_call_operand.hbm [shape: bf16[32,32], index: 1, kind: input, shape index: {}]   ;;  %s443_s2 = inlined_call_operand.vmem [shape: f32[1,32], index: 2, kind: input, shape index: {}]   ;;  %s444_s3 = inlined_call_operand.hbm [shape: bf16[32,32], index: 3, kind: input, shape index: {}]   ;;  %s445_s4 = inlined_call_operand.vmem [shape: f32[1,32], index: 4, kind: input, shape index: {}]   ;;  %s446_s5 = inlined_call_operand.hbm [shape: bf16[16,32], index: 5, kind: output, shape index: {}]  }
   0x1   :  { %11 = vsyncpa [#allocation6], 0 }
   0x2   :  { %12 = vsyncpa [#allocation4], 0  ;;  %s371_s18 = smov [#allocation5]   ;;  %s372_s20 = smov [#allocation2]  }
   0x3   :  { %s30_s19 = sshll.u32 %s371_s18, 4  ;;  %s18_s21 = sshll.u32 %s372_s20, 4  ;;  %s31_s19 = int_to_ptr.vmem [resolvable:$true] %s30_s19  ;;  %s19_s21 = int_to_ptr.vmem [resolvable:$true] %s18_s21 }
   0x4   :  { %s293_s22 = scalar_lea.vmem %s31_s19, 256  ;;  %p298_p1 = scmp.lt.s32.totalorder %s31_s19, %s31_s19 }
   0x5   :  { %p294_p0 = scmp.ne.s32.totalorder %s31_s19, %s293_s22  ;;  %p299_p2 = scmp.lt.s32.totalorder %s293_s22, %s293_s22 }
   0x7   :  { %p300_p3 = por %p299_p2, %p298_p1 }
   0x9   :  { %p301_p4 = pnand %p300_p3, %p294_p0 }
   0xb   :  { %304 = shalt.err (!%p301_p4)
}
   0xc   :  { %s373_s23 = smov 64   ;;  %s374_s24 = smov 4  }
   0xd   :  { %36 = dma.hbm_to_vmem [thread:$0]  %s442_s1, 256, %s31_s19, [#allocation6], %s373_s23, %s373_s23, %s374_s24  }
   0xe   :  { %s313_s27 = scalar_lea.vmem %s19_s21, 128  ;;  %p318_p6 = scmp.lt.s32.totalorder %s19_s21, %s19_s21 }
   0xf   :  { %p314_p5 = scmp.ne.s32.totalorder %s19_s21, %s313_s27  ;;  %p319_p7 = scmp.lt.s32.totalorder %s313_s27, %s313_s27 }
  0x11   :  { %p320_p8 = por %p319_p7, %p318_p6 }
  0x13   :  { %p321_p9 = pnand %p320_p8, %p314_p5 }
  0x15   :  { %324 = shalt.err (!%p321_p9)
}
  0x16   :  { %24 = dma.hbm_to_vmem [thread:$0]  %s441_s0, 128, %s19_s21, [#allocation3], %s373_s23, %s373_s23, %s374_s24  }
  0x17   :  { %s375_s30 = smov [#allocation7]  }
  0x18   :  { %s44_s6 = sshll.u32 %s375_s30, 4  ;;  %s45_s6 = int_to_ptr.vmem [resolvable:$true] %s44_s6 }
  0x19   :  { %s333_s7 = scalar_lea.vmem %s45_s6, 256  ;;  %p338_p11 = scmp.lt.s32.totalorder %s45_s6, %s45_s6 }
  0x1a   :  { %p334_p10 = scmp.ne.s32.totalorder %s45_s6, %s333_s7  ;;  %p339_p12 = scmp.lt.s32.totalorder %s333_s7, %s333_s7 }
  0x1c   :  { %p340_p13 = por %p339_p12, %p338_p11 }
  0x1e   :  { %p341_p0 = pnand %p340_p13, %p334_p10 }
  0x20   :  { %344 = shalt.err (!%p341_p0)
}
  0x21   :  { %50 = dma.hbm_to_vmem [thread:$0]  %s444_s3, 256, %s45_s6, [#allocation6], %s373_s23, %s373_s23, %s374_s24  }
  0x22   :  { %365 = dma.done.wait [#allocation3], 128  }
  0x23   :  { %366 = vsyncadd [#allocation3], 4294967168 }
  0x24   :  { %367 = dma.done.wait [#allocation6], 512  }
  0x25   :  { %368 = vsyncadd [#allocation6], 4294966784  ;;  %v376_v0 = vmov 0.0   ;;  %vm377_vm0 = vmmov 0   ;;  %v280_v1 = vld [vmem:[#allocation5 + $0x8] sm:$0xff]   ;;  %v281_v2 = vld [vmem:[#allocation5] sm:$0xff]  }
  0x26   :  { %256 = vmatprep.subr.bf16.mxu0 %v376_v0  ;;  %260 = vmatprep.mubr.msk.bf16.mxu0 %vm377_vm0, %v376_v0  ;;  %v282_v3 = vld [vmem:[#allocation2] sm:$0xff]   ;;  %vm93_vm1 = vcmask 261120   ;;  %v284_v5 = vld [vmem:[#allocation7] sm:$0xff]   ;;  %vm216_vm2 = vcmask 257024  }
  0x27   :  { %264 = vmatprep.subr.bf16.mxu1 %v376_v0  ;;  %268 = vmatprep.mubr.msk.bf16.mxu1 %vm377_vm0, %v376_v0  ;;  %v283_v4 = vld [vmem:[#allocation7 + $0x8] sm:$0xff]  }
  0x28   :  { %257 = vmatpush3.bf16.msra.mxu0 %v280_v1  ;;  %265 = vmatpush3.bf16.msra.mxu1 %v283_v4  ;;  %v237_v6 = vld [vmem:[%s443_s2] ss:$0 sm:$0xff]  ;;  %s378_s2 = smov [#allocation8]  }
  0x29   :  { %258 = vmatprep.subr.bf16.mxu0 %v376_v0  ;;  %266 = vmatprep.subr.bf16.mxu1 %v376_v0  ;;  %v242_v16 = vld [vmem:[%s445_s4] ss:$0 sm:$0xff]  ;;  %s224_s11 = sshll.u32 %s378_s2, 4  ;;  %s225_s11 = int_to_ptr.vmem [resolvable:$true] %s224_s11 }
  0x2a   :  { %s345_s12 = scalar_lea.vmem %s225_s11, 128  ;;  %p350_p2 = scmp.lt.s32.totalorder %s225_s11, %s225_s11 }
  0x2b   :  { %p346_p1 = scmp.ne.s32.totalorder %s225_s11, %s345_s12  ;;  %p351_p3 = scmp.lt.s32.totalorder %s345_s12, %s345_s12 }
  0x2c   :  { %259 = vmatpush3.bf16.msra.mxu0 %v281_v2  ;;  %267 = vmatpush3.bf16.msra.mxu1 %v284_v5 }
  0x2d   :  { %p352_p4 = por %p351_p3, %p350_p2 }
  0x2f   :  { %261 = vmatmul.mubr.msk.bf16.vlgmr.msra.gmra.mxu0 %vm93_vm1, %v282_v3  ;;  %p353_p5 = pnand %p352_p4, %p346_p1 }
  0xef   :  { %v131_v7 = vpop.f32.mrf.mxu0 }
  0xf0   :  { %v132_v9 = vadd.f32 %v237_v6, %v131_v7 }
  0xf1   :  { %v262_v8 = vpop.f32.mrf.mxu0 }
  0xf2   :  { %v138_v13 = vmax.f32 %v132_v9, 0.0 }
  0xf3   :  { %v134_v10 = vpop.f32.mrf.mxu0 }
  0xf4   :  { %v135_v11 = vadd.f32 %v237_v6, %v134_v10 }
  0xf5   :  { %v263_v12 = vpop.f32.mrf.mxu0 }
  0xf6   :  { %v139_v14 = vmax.f32 %v135_v11, 0.0 }
  0xf8   :  { %v140_v15 = vpack.c.bf16 %v139_v14, %v138_v13 }
  0xfa   :  { %269 = vmatmul.mubr.msk.bf16.vlgmr.msra.gmra.mxu1 %vm93_vm1, %v140_v15 }
 0x1ba   :  { %v201_v17 = vpop.f32.mrf.mxu1 }
 0x1bb   :  { %v202_v18 = vadd.f32 %v242_v16, %v201_v17 }
 0x1bc   :  { %v270_v19 = vpop.f32.mrf.mxu1 }
 0x1bd   :  { %v248_v20 = vpack.c.bf16 %v202_v18, %v202_v18 }
 0x1be   :  { %v204_v21 = vpop.f32.mrf.mxu1 }
 0x1bf   :  { %v205_v22 = vadd.f32 %v242_v16, %v204_v21  ;;  %217 = vst.msk [vmem:[#allocation8] sm:$0xf] %vm216_vm2, %v248_v20 }
 0x1c0   :  { %v271_v23 = vpop.f32.mrf.mxu1 }
 0x1c1   :  { %v249_v24 = vpack.c.bf16 %v205_v22, %v205_v22 }
 0x1c3   :  { %218 = vst.msk [vmem:[#allocation8 + $0x4] sm:$0xf] %vm216_vm2, %v249_v24 }
 0x1c4   :  { %356 = shalt.err (!%p353_p5)
}
 0x1c5   :  { %230 = dma.vmem_to_hbm [thread:$0]  %s225_s11, 128, %s446_s5, [#allocation4], %s373_s23, %s373_s23, %s374_s24  }
 0x1c6   :  { %369 = dma.done.wait [#allocation4], 128  }
 0x1c7   :  { %370 = vsyncadd [#allocation4], 4294967168 }
 0x1c8   :  { %234 = vsyncpa [#allocation3], 1 }
 0x1c9   :  { %235 = vsyncpa [#allocation6], 1 }
 0x1ca   :  { %236 = vsyncpa [#allocation4], 1 }

</bundles_post_ra>
